<compile_context>
chip_gen: v5e
topology: v5e:2x2
jax: 0.10.0
libtpu: 0.0.40
codegen_flags: <defaults>
</compile_context>

<pallas_src>
import jax
import jax.numpy as jnp
from jax import lax
from jax.experimental import pallas as pl
from jax.experimental.pallas import tpu as pltpu

# ----------------------------- configuration -------------------------------
HIDDEN_DIM = 32
NUM_LEVELS = 3
MAX_SUPERPOSITION_DIM = 4
LEVEL_DIMS = [HIDDEN_DIM * 2 ** (NUM_LEVELS - i - 1) for i in range(NUM_LEVELS)]
D0, D1, D2 = LEVEL_DIMS                                    # 128, 64, 32
assert D0 == 128 and D0 == 2 * D1 and D1 == 2 * D2, \
    "roll-based pair-mean compression assumes lane width 128 with D1=64, D2=32"
T_OUT = HIDDEN_DIM * MAX_SUPERPOSITION_DIM // NUM_LEVELS   # 42
D_OUT = D0 + D1 + D2                                       # 224
T_PAD = ((T_OUT + 7) // 8) * 8                             # 48 (sublane aligned)
D_OUT_PAD = 2 * D0                                         # 256 (lane-dense slab)

# packed-slab gate-logit column positions
_GCOL0 = D0 + D1          # 192: gate0(x0) logit column in stage-A output
_GCOL1 = D0 + D1 + 1      # 193: gate1(x1)
_GCOL2 = D0 + D1 + 2      # 194: gate2(x2)
_GCOL1D = D1 + D2         # 96 : gate1(u1) logit column in stage-B output


# ------------------------------- kernel -------------------------------------
def _fused_kernel(x_ref, sel_ref, wa_ref, wb_ref, wc_ref, b_ref, out_ref):
    # x_ref  : (M, 128) f32  -- M = Bblk*S stacked rows (batch-major, seq-minor)
    # sel_ref: (Bblk*T_PAD, M) f32 -- block-diag nearest-neighbour selector
    # wa_ref : (256, 256) f32 -- [up0 | up1 | gate0/1/2]   (stage A)
    # wb_ref : (256, 128) f32 -- [down0 | gate1(u1)]       (stage B)
    # wc_ref : (128, 128) f32 -- [down1]                   (stage C)
    # b_ref  : (8, 128)  f32 -- rows 0-3 projection biases, rows 4-6 gate biases
    # out_ref: (Bblk*T_PAD, 256) f32 -- [d0 | d1 | d2 | 0] interpolated along seq
    x0 = x_ref[...]
    bias = b_ref[...]
    m = x0.shape[0]
    lane = lax.broadcasted_iota(jnp.int32, (m, D0), 1)

    def sig(t):                                  # sigmoid via EUP exp
        return 1.0 / (1.0 + jnp.exp(-t))

    def mm(a, w):                                # f32 MXU, f32 accumulate
        return jnp.dot(a, w, preferred_element_type=jnp.float32)

    # ----- level compression view(B,S,2,-1).mean(2), kept 128-lane padded ----
    # (all rolls use shift=width/2 or act on a 64-periodic signal, so the
    # rotation direction is immaterial)
    y = 0.5 * (x0 + pltpu.roll(x0, shift=D1, axis=1))    # x1[j]=(x0[j]+x0[j+64])/2
    x1 = jnp.where(lane < D1, y, 0.0)                    # x1 in lanes [0, 64)
    z = 0.5 * (y + pltpu.roll(y, shift=D2, axis=1))      # y is 64-periodic
    x2 = jnp.where(lane < D2, z, 0.0)                    # x2 in lanes [0, 32)

    # ----- stage A: ONE fused MXU pass: up0(x1), up1(x2), g0/g1/g2 logits -----
    x12 = x1 + pltpu.roll(x2, shift=D1, axis=1)          # [x1 | x2 | 0] lanes 0-95
    pa = mm(jnp.concatenate([x0, x12], axis=1), wa_ref[...])        # (M, 256)
    g0 = sig(pa[:, _GCOL0:_GCOL0 + 1] + bias[4:5, 0:1])
    g1 = sig(pa[:, _GCOL1:_GCOL1 + 1] + bias[5:6, 0:1])
    g2d = sig(pa[:, _GCOL2:_GCOL2 + 1] + bias[6:7, 0:1])
    up0 = pa[:, 0:D0] + bias[0:1, :]
    up1 = jnp.where(lane < D1, pa[:, D0:2 * D0] + bias[1:2, :], 0.0)

    # ----- propagate_up (dimension-consistent variant, see TODO above) -----
    u0 = g0 * x0 + (1.0 - g0) * up0                      # (M, 128)
    u1 = g1 * x1 + (1.0 - g1) * up1                      # zero past lane 63
    d0 = u0                                              # u2 == x2

    # ----- stage B: fused down0(d0) + gate1(u1)  (propagate_down step 0) -----
    pb = mm(jnp.concatenate([d0, u1], axis=1), wb_ref[...])         # (M, 128)
    g1d = sig(pb[:, _GCOL1D:_GCOL1D + 1] + bias[5:6, 0:1])
    dn0 = jnp.where(lane < D1, pb + bias[2:3, :], 0.0)
    d1 = g1d * u1 + (1.0 - g1d) * dn0                    # zero past lane 63

    # ----- stage C: down1(d1)  (propagate_down step 1) -----
    dn1 = mm(d1, wc_ref[...]) + bias[3:4, :]             # zero past lane 31
    d2 = g2d * x2 + (1.0 - g2d) * dn1                    # zero past lane 31

    # ----- nearest interp (block-diag selector) + lane-dense concat & store ---
    right = d1 + pltpu.roll(d2, shift=D1, axis=1)        # [d1 | d2 | 0] lanes 0-95
    cat = jnp.concatenate([d0, right], axis=1)           # (M, 256) = [d0|d1|d2|0]
    out_ref[...] = mm(sel_ref[...], cat)                 # (Bblk*T_PAD, 256)


# ------------------------------- packing (once) ------------------------------
def pick_block_batch(batch, seq, target_rows=256, min_rows=128):
    """Batch elements per grid step.  target_rows ~256 fills the v6e/v7x MXU
    (use 128 on v5e); when possible keep >=2 grid steps so v7x's two
    TensorCores both get work via the 'parallel' grid axis."""
    bblk = max(1, min(batch, target_rows // seq))
    while batch % bblk:
        bblk -= 1
    if batch // bblk == 1:
        for cand in range(bblk // 2, 0, -1):
            if batch % cand == 0 and cand * seq >= min_rows:
                bblk = cand
                break
    return bblk


def pack_params(params):
    """Pack the 14 Linear params into 3 lane-dense f32 weight slabs + biases.
    Hoisted out of the jitted per-call path (built once)."""
    wa = jnp.zeros((2 * D0, 2 * D0), jnp.float32)
    wa = wa.at[0:D0, _GCOL0].set(params["gate_w0"][:, 0])
    wa = wa.at[D0:D0 + D1, 0:D0].set(params["up_w0"])
    wa = wa.at[D0:D0 + D1, _GCOL1].set(params["gate_w1"][:, 0])
    wa = wa.at[D0 + D1:D0 + D1 + D2, D0:D0 + D1].set(params["up_w1"])
    wa = wa.at[D0 + D1:D0 + D1 + D2, _GCOL2].set(params["gate_w2"][:, 0])

    wb = jnp.zeros((2 * D0, D0), jnp.float32)
    wb = wb.at[0:D0, 0:D1].set(params["down_w0"])
    wb = wb.at[D0:D0 + D1, _GCOL1D].set(params["gate_w1"][:, 0])

    wc = jnp.zeros((D0, D0), jnp.float32)
    wc = wc.at[0:D1, 0:D2].set(params["down_w1"])

    b = jnp.zeros((8, D0), jnp.float32)
    b = b.at[0, :D0].set(params["up_b0"][0])
    b = b.at[1, :D1].set(params["up_b1"][0])
    b = b.at[2, :D1].set(params["down_b0"][0])
    b = b.at[3, :D2].set(params["down_b1"][0])
    b = b.at[4, 0].set(params["gate_b0"][0, 0])
    b = b.at[5, 0].set(params["gate_b1"][0, 0])
    b = b.at[6, 0].set(params["gate_b2"][0, 0])
    return {"w_a": wa, "w_b": wb, "w_c": wc, "bias": b}


def nearest_src_indices(seq):
    # Mimic F.interpolate(mode='nearest'): src = floor(t * float32(S/T)), clamped.
    scale = jnp.float32(seq) / jnp.float32(T_OUT)
    t = jnp.arange(T_OUT, dtype=jnp.float32)
    return jnp.minimum(jnp.floor(t * scale).astype(jnp.int32), seq - 1)


def build_selector(seq, bblk):
    """Block-diagonal (Bblk*T_PAD, Bblk*S) one-hot nearest-neighbour selector
    (rows >= T_OUT per block are zero padding).  Built once, stays resident."""
    src = nearest_src_indices(seq)
    src = jnp.concatenate([src, jnp.full((T_PAD - T_OUT,), -1, jnp.int32)])
    sel1 = (src[:, None] == jnp.arange(seq)[None, :]).astype(jnp.float32)
    return jnp.kron(jnp.eye(bblk, dtype=jnp.float32), sel1)


# ------------------------------- wrapper -------------------------------------
def hierarchical_state_protocol(input_state, packed, sel, *, bblk):
    B, S, Din = input_state.shape
    assert Din == D0, f"expected last dim {D0}, got {Din}"
    assert B % bblk == 0, "bblk must divide batch"
    assert (bblk * S) % 8 == 0, "per-step row count must be sublane aligned"

    x2d = input_state.reshape(B * S, D0)       # contiguous reshape (free)
    rows_in = bblk * S
    rows_out = bblk * T_PAD
    steps = B // bblk

    flops = steps * (2 * rows_in * (2 * D0) * (2 * D0)        # stage A
                     + 2 * rows_in * (2 * D0) * D0            # stage B
                     + 2 * rows_in * D0 * D0                  # stage C
                     + 2 * rows_out * rows_in * D_OUT_PAD)    # selection
    bytes_accessed = ((B * S * D0 + B * T_PAD * D_OUT_PAD) * 4
                      + (sel.size + packed["w_a"].size + packed["w_b"].size
                         + packed["w_c"].size + packed["bias"].size) * 4)

    out_padded = pl.pallas_call(
        _fused_kernel,
        out_shape=jax.ShapeDtypeStruct((B * T_PAD, D_OUT_PAD), jnp.float32),
        grid=(steps,),
        in_specs=[
            pl.BlockSpec((rows_in, D0), lambda g: (g, 0)),        # batch-group rows
            pl.BlockSpec((rows_out, rows_in), lambda g: (0, 0)),  # resident selector
            pl.BlockSpec((2 * D0, 2 * D0), lambda g: (0, 0)),     # resident W_A
            pl.BlockSpec((2 * D0, D0), lambda g: (0, 0)),         # resident W_B
            pl.BlockSpec((D0, D0), lambda g: (0, 0)),             # resident W_C
            pl.BlockSpec((8, D0), lambda g: (0, 0)),              # resident biases
        ],
        out_specs=pl.BlockSpec((rows_out, D_OUT_PAD), lambda g: (g, 0)),
        compiler_params=pltpu.CompilerParams(
            dimension_semantics=("parallel",)),   # shard batch groups over TCs
        cost_estimate=pl.CostEstimate(
            flops=flops, transcendentals=4 * B * S, bytes_accessed=bytes_accessed),
    )(x2d, sel, packed["w_a"], packed["w_b"], packed["w_c"], packed["bias"])

    # strip sublane / lane padding (tiny XLA slice of the small output)
    out = out_padded.reshape(B, T_PAD, D_OUT_PAD)[:, :T_OUT, :D_OUT]
    return out                                      # (B, T_OUT, D0+D1+D2)


# ------------------------------ parameters -----------------------------------
def init_params(key):
    ks = jax.random.split(key, 14)

    def lin(k, fan_in, shape):
        bound = 1.0 / (fan_in ** 0.5)               # torch.nn.Linear default init
        return jax.random.uniform(k, shape, jnp.float32, -bound, bound)

    return {
        # up_projections[i]: Linear(level_dims[i+1] -> level_dims[i]),  (in, out)
        "up_w0": lin(ks[0], D1, (D1, D0)), "up_b0": lin(ks[1], D1, (1, D0)),
        "up_w1": lin(ks[2], D2, (D2, D1)), "up_b1": lin(ks[3], D2, (1, D1)),
        # down_projections[i]: Linear(level_dims[i] -> level_dims[i+1])
        "down_w0": lin(ks[4], D0, (D0, D1)), "down_b0": lin(ks[5], D0, (1, D1)),
        "down_w1": lin(ks[6], D1, (D1, D2)), "down_b1": lin(ks[7], D1, (1, D2)),
        # level_gates[i]: Linear(level_dims[i] -> 1) + sigmoid
        "gate_w0": lin(ks[8], D0, (D0, 1)), "gate_b0": lin(ks[9], D0, (1, 1)),
        "gate_w1": lin(ks[10], D1, (D1, 1)), "gate_b1": lin(ks[11], D1, (1, 1)),
        "gate_w2": lin(ks[12], D2, (D2, 1)), "gate_b2": lin(ks[13], D2, (1, 1)),
    }


# --------------------------- pure-JAX reference ------------------------------
def reference_forward(input_state, params, src):
    """Same (dimension-consistent) math, plain XLA — used as a sanity check."""
    x0 = input_state
    x1 = 0.5 * (x0[..., :D1] + x0[..., D1:])
    x2 = 0.5 * (x1[..., :D2] + x1[..., D2:])
    sig = jax.nn.sigmoid
    g0 = sig(x0 @ params["gate_w0"] + params["gate_b0"][0])
    u0 = g0 * x0 + (1 - g0) * (x1 @ params["up_w0"] + params["up_b0"][0])
    g1 = sig(x1 @ params["gate_w1"] + params["gate_b1"][0])
    u1 = g1 * x1 + (1 - g1) * (x2 @ params["up_w1"] + params["up_b1"][0])
    u2 = x2
    d0 = u0
    g1d = sig(u1 @ params["gate_w1"] + params["gate_b1"][0])
    d1 = g1d * u1 + (1 - g1d) * (d0 @ params["down_w0"] + params["down_b0"][0])
    g2d = sig(u2 @ params["gate_w2"] + params["gate_b2"][0])
    d2 = g2d * u2 + (1 - g2d) * (d1 @ params["down_w1"] + params["down_b1"][0])
    gather = lambda s: s[:, src, :]
    return jnp.concatenate([gather(d0), gather(d1), gather(d2)], axis=-1)


# --------------------------------- main ---------------------------------------
if __name__ == "__main__":
    key = jax.random.PRNGKey(0)
    kx, kp = jax.random.split(key)

    B, S = 2, 8
    input_state = jax.random.normal(kx, (B, S, D0), jnp.float32)   # (2, 8, 128)
    params = init_params(kp)

    # one-time prep, hoisted out of the per-call path
    bblk = pick_block_batch(B, S)
    packed = pack_params(params)
    sel = build_selector(S, bblk)

    fwd = jax.jit(hierarchical_state_protocol, static_argnames=("bblk",))
    out = jax.block_until_ready(fwd(input_state, packed, sel, bblk=bblk))

    assert out.shape == (B, T_OUT, D_OUT), out.shape               # (2, 42, 224)
    assert bool(jnp.all(jnp.isfinite(out)))

    # sanity check against the pure-JAX reference of the same math
    ref = reference_forward(input_state, params, nearest_src_indices(S))
    err = float(jnp.max(jnp.abs(out - ref)))
    assert err < 1e-1, f"max abs error vs reference: {err}"

    print("KERNEL_OK")
</pallas_src>

<mosaic_0001>
module attributes {stable_mosaic.version = 11 : i64} {
  func.func @_fused_kernel(%arg0: i32, %arg1: memref<16x128xf32, #tpu.memory_space<vmem>>, %arg2: memref<96x16xf32, #tpu.memory_space<vmem>>, %arg3: memref<256x256xf32, #tpu.memory_space<vmem>>, %arg4: memref<256x128xf32, #tpu.memory_space<vmem>>, %arg5: memref<128x128xf32, #tpu.memory_space<vmem>>, %arg6: memref<8x128xf32, #tpu.memory_space<vmem>>, %arg7: memref<96x256xf32, #tpu.memory_space<vmem>>) attributes {dimension_semantics = [#tpu.dimension_semantics<parallel>], iteration_bounds = array<i64: 1>, scalar_prefetch = 0 : i64, scratch_operands = 0 : i64, tpu.core_type = #tpu.core_type<tc>, window_params = [{transform_indices = @transform_0, window_bounds = array<i64: 16, 128>}, {pipeline_mode = #tpu.pipeline_mode<synchronous>, transform_indices = @transform_1, window_bounds = array<i64: 96, 16>}, {pipeline_mode = #tpu.pipeline_mode<synchronous>, transform_indices = @transform_2, window_bounds = array<i64: 256, 256>}, {pipeline_mode = #tpu.pipeline_mode<synchronous>, transform_indices = @transform_3, window_bounds = array<i64: 256, 128>}, {pipeline_mode = #tpu.pipeline_mode<synchronous>, transform_indices = @transform_4, window_bounds = array<i64: 128, 128>}, {pipeline_mode = #tpu.pipeline_mode<synchronous>, transform_indices = @transform_5, window_bounds = array<i64: 8, 128>}, {transform_indices = @transform_6, window_bounds = array<i64: 96, 256>}]} {
    %c0 = arith.constant 0 : index
    %c0_0 = arith.constant 0 : index
    %0 = vector.load %arg1[%c0, %c0_0] : memref<16x128xf32, #tpu.memory_space<vmem>>, vector<16x128xf32>
    %c0_1 = arith.constant 0 : index
    %c0_2 = arith.constant 0 : index
    %1 = vector.load %arg6[%c0_1, %c0_2] : memref<8x128xf32, #tpu.memory_space<vmem>>, vector<8x128xf32>
    %2 = tpu.iota {dimensions = array<i32: 1>} : vector<16x128xi32>
    %c64_i32 = arith.constant 64 : i32
    %3 = tpu.dynamic_rotate %0 by %c64_i32 dim 1 : vector<16x128xf32>, i32 -> vector<16x128xf32>
    %4 = arith.addf %0, %3 : vector<16x128xf32>
    %cst = arith.constant 5.000000e-01 : f32
    %5 = vector.broadcast %cst : f32 to vector<16x128xf32>
    %6 = arith.mulf %5, %4 : vector<16x128xf32>
    %c64_i32_3 = arith.constant 64 : i32
    %7 = vector.broadcast %c64_i32_3 : i32 to vector<16x128xi32>
    %8 = arith.cmpi slt, %2, %7 : vector<16x128xi32>
    %cst_4 = arith.constant 0.000000e+00 : f32
    %9 = vector.broadcast %cst_4 : f32 to vector<16x128xf32>
    %10 = arith.select %8, %6, %9 : vector<16x128xi1>, vector<16x128xf32>
    %c32_i32 = arith.constant 32 : i32
    %11 = tpu.dynamic_rotate %6 by %c32_i32 dim 1 : vector<16x128xf32>, i32 -> vector<16x128xf32>
    %12 = arith.addf %6, %11 : vector<16x128xf32>
    %cst_5 = arith.constant 5.000000e-01 : f32
    %13 = vector.broadcast %cst_5 : f32 to vector<16x128xf32>
    %14 = arith.mulf %13, %12 : vector<16x128xf32>
    %c32_i32_6 = arith.constant 32 : i32
    %15 = vector.broadcast %c32_i32_6 : i32 to vector<16x128xi32>
    %16 = arith.cmpi slt, %2, %15 : vector<16x128xi32>
    %cst_7 = arith.constant 0.000000e+00 : f32
    %17 = vector.broadcast %cst_7 : f32 to vector<16x128xf32>
    %18 = arith.select %16, %14, %17 : vector<16x128xi1>, vector<16x128xf32>
    %c64_i32_8 = arith.constant 64 : i32
    %19 = tpu.dynamic_rotate %18 by %c64_i32_8 dim 1 : vector<16x128xf32>, i32 -> vector<16x128xf32>
    %20 = arith.addf %10, %19 : vector<16x128xf32>
    %21 = tpu.concatenate %0, %20 in 1 : vector<16x128xf32>, vector<16x128xf32> -> vector<16x256xf32>
    %c0_9 = arith.constant 0 : index
    %c0_10 = arith.constant 0 : index
    %22 = vector.load %arg3[%c0_9, %c0_10] : memref<256x256xf32, #tpu.memory_space<vmem>>, vector<256x256xf32>
    %cst_11 = arith.constant dense<0.000000e+00> : vector<16x256xf32>
    %23 = tpu.matmul %21, %22, %cst_11 {dimension_numbers = #tpu.dot_dimension_numbers<[1], [0], [0], [1], [0, 0, 1, 1], [], []>} : vector<16x256xf32>, vector<256x256xf32>, vector<16x256xf32> -> vector<16x256xf32>
    %24 = vector.extract_strided_slice %23 {offsets = [0, 192], sizes = [16, 1], strides = [1, 1]} : vector<16x256xf32> to vector<16x1xf32>
    %25 = vector.extract_strided_slice %1 {offsets = [4, 0], sizes = [1, 1], strides = [1, 1]} : vector<8x128xf32> to vector<1x1xf32>
    %26 = vector.broadcast %25 : vector<1x1xf32> to vector<16x1xf32>
    %27 = arith.addf %24, %26 : vector<16x1xf32>
    %cst_12 = arith.constant 0.000000e+00 : f32
    %28 = vector.broadcast %cst_12 : f32 to vector<16x1xf32>
    %29 = arith.subf %28, %27 : vector<16x1xf32>
    %30 = math.exp %29 : vector<16x1xf32>
    %cst_13 = arith.constant 1.000000e+00 : f32
    %31 = vector.broadcast %cst_13 : f32 to vector<16x1xf32>
    %32 = arith.addf %31, %30 : vector<16x1xf32>
    %cst_14 = arith.constant 1.000000e+00 : f32
    %33 = vector.broadcast %cst_14 : f32 to vector<16x1xf32>
    %34 = arith.divf %33, %32 : vector<16x1xf32>
    %35 = vector.extract_strided_slice %23 {offsets = [0, 193], sizes = [16, 1], strides = [1, 1]} : vector<16x256xf32> to vector<16x1xf32>
    %36 = vector.extract_strided_slice %1 {offsets = [5, 0], sizes = [1, 1], strides = [1, 1]} : vector<8x128xf32> to vector<1x1xf32>
    %37 = vector.broadcast %36 : vector<1x1xf32> to vector<16x1xf32>
    %38 = arith.addf %35, %37 : vector<16x1xf32>
    %cst_15 = arith.constant 0.000000e+00 : f32
    %39 = vector.broadcast %cst_15 : f32 to vector<16x1xf32>
    %40 = arith.subf %39, %38 : vector<16x1xf32>
    %41 = math.exp %40 : vector<16x1xf32>
    %cst_16 = arith.constant 1.000000e+00 : f32
    %42 = vector.broadcast %cst_16 : f32 to vector<16x1xf32>
    %43 = arith.addf %42, %41 : vector<16x1xf32>
    %cst_17 = arith.constant 1.000000e+00 : f32
    %44 = vector.broadcast %cst_17 : f32 to vector<16x1xf32>
    %45 = arith.divf %44, %43 : vector<16x1xf32>
    %46 = vector.extract_strided_slice %23 {offsets = [0, 194], sizes = [16, 1], strides = [1, 1]} : vector<16x256xf32> to vector<16x1xf32>
    %47 = vector.extract_strided_slice %1 {offsets = [6, 0], sizes = [1, 1], strides = [1, 1]} : vector<8x128xf32> to vector<1x1xf32>
    %48 = vector.broadcast %47 : vector<1x1xf32> to vector<16x1xf32>
    %49 = arith.addf %46, %48 : vector<16x1xf32>
    %cst_18 = arith.constant 0.000000e+00 : f32
    %50 = vector.broadcast %cst_18 : f32 to vector<16x1xf32>
    %51 = arith.subf %50, %49 : vector<16x1xf32>
    %52 = math.exp %51 : vector<16x1xf32>
    %cst_19 = arith.constant 1.000000e+00 : f32
    %53 = vector.broadcast %cst_19 : f32 to vector<16x1xf32>
    %54 = arith.addf %53, %52 : vector<16x1xf32>
    %cst_20 = arith.constant 1.000000e+00 : f32
    %55 = vector.broadcast %cst_20 : f32 to vector<16x1xf32>
    %56 = arith.divf %55, %54 : vector<16x1xf32>
    %57 = vector.extract_strided_slice %23 {offsets = [0, 0], sizes = [16, 128], strides = [1, 1]} : vector<16x256xf32> to vector<16x128xf32>
    %58 = vector.extract_strided_slice %1 {offsets = [0, 0], sizes = [1, 128], strides = [1, 1]} : vector<8x128xf32> to vector<1x128xf32>
    %59 = vector.broadcast %58 : vector<1x128xf32> to vector<16x128xf32>
    %60 = arith.addf %57, %59 : vector<16x128xf32>
    %c64_i32_21 = arith.constant 64 : i32
    %61 = vector.broadcast %c64_i32_21 : i32 to vector<16x128xi32>
    %62 = arith.cmpi slt, %2, %61 : vector<16x128xi32>
    %63 = vector.extract_strided_slice %23 {offsets = [0, 128], sizes = [16, 128], strides = [1, 1]} : vector<16x256xf32> to vector<16x128xf32>
    %64 = vector.extract_strided_slice %1 {offsets = [1, 0], sizes = [1, 128], strides = [1, 1]} : vector<8x128xf32> to vector<1x128xf32>
    %65 = vector.broadcast %64 : vector<1x128xf32> to vector<16x128xf32>
    %66 = arith.addf %63, %65 : vector<16x128xf32>
    %cst_22 = arith.constant 0.000000e+00 : f32
    %67 = vector.broadcast %cst_22 : f32 to vector<16x128xf32>
    %68 = arith.select %62, %66, %67 : vector<16x128xi1>, vector<16x128xf32>
    %69 = vector.broadcast %34 : vector<16x1xf32> to vector<16x128xf32>
    %70 = arith.mulf %69, %0 : vector<16x128xf32>
    %cst_23 = arith.constant 1.000000e+00 : f32
    %71 = vector.broadcast %cst_23 : f32 to vector<16x1xf32>
    %72 = arith.subf %71, %34 : vector<16x1xf32>
    %73 = vector.broadcast %72 : vector<16x1xf32> to vector<16x128xf32>
    %74 = arith.mulf %73, %60 : vector<16x128xf32>
    %75 = arith.addf %70, %74 : vector<16x128xf32>
    %76 = vector.broadcast %45 : vector<16x1xf32> to vector<16x128xf32>
    %77 = arith.mulf %76, %10 : vector<16x128xf32>
    %cst_24 = arith.constant 1.000000e+00 : f32
    %78 = vector.broadcast %cst_24 : f32 to vector<16x1xf32>
    %79 = arith.subf %78, %45 : vector<16x1xf32>
    %80 = vector.broadcast %79 : vector<16x1xf32> to vector<16x128xf32>
    %81 = arith.mulf %80, %68 : vector<16x128xf32>
    %82 = arith.addf %77, %81 : vector<16x128xf32>
    %83 = tpu.concatenate %75, %82 in 1 : vector<16x128xf32>, vector<16x128xf32> -> vector<16x256xf32>
    %c0_25 = arith.constant 0 : index
    %c0_26 = arith.constant 0 : index
    %84 = vector.load %arg4[%c0_25, %c0_26] : memref<256x128xf32, #tpu.memory_space<vmem>>, vector<256x128xf32>
    %cst_27 = arith.constant dense<0.000000e+00> : vector<16x128xf32>
    %85 = tpu.matmul %83, %84, %cst_27 {dimension_numbers = #tpu.dot_dimension_numbers<[1], [0], [0], [1], [0, 0, 1, 1], [], []>} : vector<16x256xf32>, vector<256x128xf32>, vector<16x128xf32> -> vector<16x128xf32>
    %86 = vector.extract_strided_slice %85 {offsets = [0, 96], sizes = [16, 1], strides = [1, 1]} : vector<16x128xf32> to vector<16x1xf32>
    %87 = vector.extract_strided_slice %1 {offsets = [5, 0], sizes = [1, 1], strides = [1, 1]} : vector<8x128xf32> to vector<1x1xf32>
    %88 = vector.broadcast %87 : vector<1x1xf32> to vector<16x1xf32>
    %89 = arith.addf %86, %88 : vector<16x1xf32>
    %cst_28 = arith.constant 0.000000e+00 : f32
    %90 = vector.broadcast %cst_28 : f32 to vector<16x1xf32>
    %91 = arith.subf %90, %89 : vector<16x1xf32>
    %92 = math.exp %91 : vector<16x1xf32>
    %cst_29 = arith.constant 1.000000e+00 : f32
    %93 = vector.broadcast %cst_29 : f32 to vector<16x1xf32>
    %94 = arith.addf %93, %92 : vector<16x1xf32>
    %cst_30 = arith.constant 1.000000e+00 : f32
    %95 = vector.broadcast %cst_30 : f32 to vector<16x1xf32>
    %96 = arith.divf %95, %94 : vector<16x1xf32>
    %c64_i32_31 = arith.constant 64 : i32
    %97 = vector.broadcast %c64_i32_31 : i32 to vector<16x128xi32>
    %98 = arith.cmpi slt, %2, %97 : vector<16x128xi32>
    %99 = vector.extract_strided_slice %1 {offsets = [2, 0], sizes = [1, 128], strides = [1, 1]} : vector<8x128xf32> to vector<1x128xf32>
    %100 = vector.broadcast %99 : vector<1x128xf32> to vector<16x128xf32>
    %101 = arith.addf %85, %100 : vector<16x128xf32>
    %cst_32 = arith.constant 0.000000e+00 : f32
    %102 = vector.broadcast %cst_32 : f32 to vector<16x128xf32>
    %103 = arith.select %98, %101, %102 : vector<16x128xi1>, vector<16x128xf32>
    %104 = vector.broadcast %96 : vector<16x1xf32> to vector<16x128xf32>
    %105 = arith.mulf %104, %82 : vector<16x128xf32>
    %cst_33 = arith.constant 1.000000e+00 : f32
    %106 = vector.broadcast %cst_33 : f32 to vector<16x1xf32>
    %107 = arith.subf %106, %96 : vector<16x1xf32>
    %108 = vector.broadcast %107 : vector<16x1xf32> to vector<16x128xf32>
    %109 = arith.mulf %108, %103 : vector<16x128xf32>
    %110 = arith.addf %105, %109 : vector<16x128xf32>
    %c0_34 = arith.constant 0 : index
    %c0_35 = arith.constant 0 : index
    %111 = vector.load %arg5[%c0_34, %c0_35] : memref<128x128xf32, #tpu.memory_space<vmem>>, vector<128x128xf32>
    %cst_36 = arith.constant dense<0.000000e+00> : vector<16x128xf32>
    %112 = tpu.matmul %110, %111, %cst_36 {dimension_numbers = #tpu.dot_dimension_numbers<[1], [0], [0], [1], [0, 0, 1, 1], [], []>} : vector<16x128xf32>, vector<128x128xf32>, vector<16x128xf32> -> vector<16x128xf32>
    %113 = vector.extract_strided_slice %1 {offsets = [3, 0], sizes = [1, 128], strides = [1, 1]} : vector<8x128xf32> to vector<1x128xf32>
    %114 = vector.broadcast %113 : vector<1x128xf32> to vector<16x128xf32>
    %115 = arith.addf %112, %114 : vector<16x128xf32>
    %116 = vector.broadcast %56 : vector<16x1xf32> to vector<16x128xf32>
    %117 = arith.mulf %116, %18 : vector<16x128xf32>
    %cst_37 = arith.constant 1.000000e+00 : f32
    %118 = vector.broadcast %cst_37 : f32 to vector<16x1xf32>
    %119 = arith.subf %118, %56 : vector<16x1xf32>
    %120 = vector.broadcast %119 : vector<16x1xf32> to vector<16x128xf32>
    %121 = arith.mulf %120, %115 : vector<16x128xf32>
    %122 = arith.addf %117, %121 : vector<16x128xf32>
    %c64_i32_38 = arith.constant 64 : i32
    %123 = tpu.dynamic_rotate %122 by %c64_i32_38 dim 1 : vector<16x128xf32>, i32 -> vector<16x128xf32>
    %124 = arith.addf %110, %123 : vector<16x128xf32>
    %125 = tpu.concatenate %75, %124 in 1 : vector<16x128xf32>, vector<16x128xf32> -> vector<16x256xf32>
    %c0_39 = arith.constant 0 : index
    %c0_40 = arith.constant 0 : index
    %126 = vector.load %arg2[%c0_39, %c0_40] : memref<96x16xf32, #tpu.memory_space<vmem>>, vector<96x16xf32>
    %cst_41 = arith.constant dense<0.000000e+00> : vector<96x256xf32>
    %127 = tpu.matmul %126, %125, %cst_41 {dimension_numbers = #tpu.dot_dimension_numbers<[1], [0], [0], [1], [0, 0, 1, 1], [], []>} : vector<96x16xf32>, vector<16x256xf32>, vector<96x256xf32> -> vector<96x256xf32>
    %c0_42 = arith.constant 0 : index
    %c0_43 = arith.constant 0 : index
    %128 = vector.load %arg7[%c0_42, %c0_43] : memref<96x256xf32, #tpu.memory_space<vmem>>, vector<96x256xf32>
    tpu.vector_store %arg7[%c0_42, %c0_43], %127 {strides = array<i32>} : memref<96x256xf32, #tpu.memory_space<vmem>>, vector<96x256xf32>,
    return
  }
  func.func @transform_0(%arg0: i32) -> (i32, i32) {
    %c0_i32 = arith.constant 0 : i32
    %c0_i32_0 = arith.constant 0 : i32
    return %arg0, %c0_i32 : i32, i32
  }
  func.func @transform_1(%arg0: i32) -> (i32, i32) {
    %c0_i32 = arith.constant 0 : i32
    %c0_i32_0 = arith.constant 0 : i32
    %c0_i32_1 = arith.constant 0 : i32
    return %c0_i32, %c0_i32_0 : i32, i32
  }
  func.func @transform_2(%arg0: i32) -> (i32, i32) {
    %c0_i32 = arith.constant 0 : i32
    %c0_i32_0 = arith.constant 0 : i32
    %c0_i32_1 = arith.constant 0 : i32
    return %c0_i32, %c0_i32_0 : i32, i32
  }
  func.func @transform_3(%arg0: i32) -> (i32, i32) {
    %c0_i32 = arith.constant 0 : i32
    %c0_i32_0 = arith.constant 0 : i32
    %c0_i32_1 = arith.constant 0 : i32
    return %c0_i32, %c0_i32_0 : i32, i32
  }
  func.func @transform_4(%arg0: i32) -> (i32, i32) {
    %c0_i32 = arith.constant 0 : i32
    %c0_i32_0 = arith.constant 0 : i32
    %c0_i32_1 = arith.constant 0 : i32
    return %c0_i32, %c0_i32_0 : i32, i32
  }
  func.func @transform_5(%arg0: i32) -> (i32, i32) {
    %c0_i32 = arith.constant 0 : i32
    %c0_i32_0 = arith.constant 0 : i32
    %c0_i32_1 = arith.constant 0 : i32
    return %c0_i32, %c0_i32_0 : i32, i32
  }
  func.func @transform_6(%arg0: i32) -> (i32, i32) {
    %c0_i32 = arith.constant 0 : i32
    %c0_i32_0 = arith.constant 0 : i32
    return %arg0, %c0_i32 : i32, i32
  }
}

</mosaic_0001>

<bundles_post_ra>
// kernel: hierarchical_state_protocol.1
= control target key start
LH: loop header
LB: loop body
LE: loop exit
PB: predicated region body
PF: predicated region fallthrough
CT: control target
= control target key end

     0   :  { %11 = vsyncpa [#allocation3], 0  ;;  %s1358_s0 = inlined_call_operand.vmem [shape: f32[16,128], index: 0, kind: input, shape index: {}]   ;;  %s1359_s1 = inlined_call_operand.vmem [shape: f32[96,16], index: 1, kind: input, shape index: {}]   ;;  %s1360_s2 = inlined_call_operand.hbm [shape: f32[256,256], index: 2, kind: input, shape index: {}]   ;;  %s1361_s3 = inlined_call_operand.hbm [shape: f32[256,128], index: 3, kind: input, shape index: {}]   ;;  %s1362_s4 = inlined_call_operand.hbm [shape: f32[128,128], index: 4, kind: input, shape index: {}]   ;;  %s1363_s5 = inlined_call_operand.vmem [shape: f32[8,128], index: 5, kind: input, shape index: {}]   ;;  %s1364_s6 = inlined_call_operand.vmem [shape: f32[96,256], index: 6, kind: output, shape index: {}]  }
   0x1   :  { %12 = vsyncpa [#allocation5], 0  ;;  %s34_s23 = sshll.u32 %s1361_s3, 4  ;;  %s1037_s24 = smov [#allocation4]   ;;  %s35_s23 = int_to_ptr.hbm [resolvable:$true] %s34_s23 }
   0x2   :  { %s36_s25 = sshll.u32 %s1037_s24, 4  ;;  %s21_s28 = sshll.u32 %s1360_s2, 4  ;;  %s37_s25 = int_to_ptr.vmem [resolvable:$true] %s36_s25  ;;  %s22_s28 = int_to_ptr.hbm [resolvable:$true] %s21_s28 }
   0x3   :  { %s1038_s29 = smov 128   ;;  %s1039_s30 = smov 8  }
   0x4   :  { %42 = dma.hbm_to_vmem [thread:$0]  %s35_s23, 4096, %s37_s25, [#allocation5], %s1038_s29, %s1038_s29, %s1039_s30  }
   0x5   :  { %s1040_s7 = smov [#allocation2]   ;;  %s1041_s9 = smov 256  }
   0x6   :  { %s23_s8 = sshll.u32 %s1040_s7, 4  ;;  %s1042_s10 = smov 16   ;;  %s24_s8 = int_to_ptr.vmem [resolvable:$true] %s23_s8 }
   0x7   :  { %29 = dma.hbm_to_vmem [thread:$0]  %s22_s28, 8192, %s24_s8, [#allocation3], %s1041_s9, %s1041_s9, %s1042_s10  }
   0x8   :  { %s47_s12 = sshll.u32 %s1362_s4, 4  ;;  %s1043_s13 = smov [#allocation6]   ;;  %s48_s12 = int_to_ptr.hbm [resolvable:$true] %s47_s12 }
   0x9   :  { %s49_s14 = sshll.u32 %s1043_s13, 4  ;;  %s50_s14 = int_to_ptr.vmem [resolvable:$true] %s49_s14 }
   0xa   :  { %55 = dma.hbm_to_vmem [thread:$0]  %s48_s12, 2048, %s50_s14, [#allocation5], %s1038_s29, %s1038_s29, %s1039_s30  }
   0xb   :  { %1033 = dma.done.wait [#allocation3], 8192  }
   0xc   :  { %1034 = vsyncadd [#allocation3], 4294959104 }
   0xd   :  { %1035 = dma.done.wait [#allocation5], 6144  }
   0xe   :  { %1036 = vsyncadd [#allocation5], 4294961152  ;;  %v1100_v0 = vld [vmem:[%s1358_s0] sm:$0xff]  ;;  %s1044_s16 = smov 64   ;;  %v1107_v1 = vld [vmem:[%s1358_s0 + $0x8] sm:$0xff]  ;;  %s1045_s18 = smov 32   ;;  %v73_v28 = vlaneseq }
   0xf   :  { %75 = vrot.lane.b32.xlu0 %v1100_v0, %s1044_s16  ;;  %v134_v8 = vld [vmem:[#allocation2 + $0xf8] sm:$0xff]  ;;  %v132_v9 = vld [vmem:[#allocation2 + $0xe8] sm:$0xff]  ;;  %v133_v12 = vld [vmem:[#allocation2 + $0xf0] sm:$0xff]  ;;  %s1046_s20 = smov 65   ;;  %s1051_s21 = smov 66  }
  0x10   :  { %213 = vmatpush.msra.mxu2 %v134_v8  ;;  %v130_v10 = vld [vmem:[#allocation2 + $0xd8] sm:$0xff]  ;;  %v128_v11 = vld [vmem:[#allocation2 + $0xc8] sm:$0xff]  ;;  %v165_v13 = vld [vmem:[#allocation2 + $0x1f0] sm:$0xff]  ;;  %167 = vmatpush.msra.mxu0 %v133_v12  ;;  %v1119_v36 = vand.u32 127, %v73_v28 }
  0x11   :  { %v126_v14 = vld [vmem:[#allocation2 + $0xb8] sm:$0xff]  ;;  %190 = vmatpush.msra.mxu1 %v165_v13  ;;  %v131_v15 = vld [vmem:[#allocation2 + $0xe0] sm:$0xff]  ;;  %v129_v17 = vld [vmem:[#allocation2 + $0xd0] sm:$0xff] }
  0x12   :  { %214 = vmatpush.msra.mxu2 %v132_v9  ;;  %v163_v16 = vld [vmem:[#allocation2 + $0x1e0] sm:$0xff]  ;;  %v161_v18 = vld [vmem:[#allocation2 + $0x1d0] sm:$0xff]  ;;  %v124_v19 = vld [vmem:[#allocation2 + $0xa8] sm:$0xff]  ;;  %168 = vmatpush.msra.mxu0 %v131_v15  ;;  %vm94_vm0 = vcmp.lt.s32.totalorder %v1119_v36, 32  ;;  %vm83_vm1 = vcmp.lt.s32.totalorder %v1119_v36, 64 }
  0x13   :  { %191 = vmatpush.msra.mxu1 %v163_v16  ;;  %v127_v20 = vld [vmem:[#allocation2 + $0xc0] sm:$0xff]  ;;  %v122_v22 = vld [vmem:[#allocation2 + $0x98] sm:$0xff]  ;;  %v125_v23 = vld [vmem:[#allocation2 + $0xb0] sm:$0xff] }
  0x14   :  { %215 = vmatpush.msra.mxu2 %v130_v10  ;;  %v159_v21 = vld [vmem:[#allocation2 + $0x1c0] sm:$0xff]  ;;  %169 = vmatpush.msra.mxu0 %v129_v17  ;;  %v157_v24 = vld [vmem:[#allocation2 + $0x1b0] sm:$0xff]  ;;  %v120_v25 = vld [vmem:[#allocation2 + $0x88] sm:$0xff] }
  0x15   :  { %192 = vmatpush.msra.mxu1 %v161_v18  ;;  %v123_v26 = vld [vmem:[#allocation2 + $0xa0] sm:$0xff]  ;;  %v118_v29 = vld [vmem:[#allocation2 + $0x78] sm:$0xff]  ;;  %v121_v30 = vld [vmem:[#allocation2 + $0x90] sm:$0xff] }
  0x16   :  { %216 = vmatpush.msra.mxu2 %v128_v11  ;;  %170 = vmatpush.msra.mxu0 %v127_v20  ;;  %v155_v27 = vld [vmem:[#allocation2 + $0x1a0] sm:$0xff]  ;;  %v153_v31 = vld [vmem:[#allocation2 + $0x190] sm:$0xff]  ;;  %v116_v32 = vld [vmem:[#allocation2 + $0x68] sm:$0xff] }
  0x17   :  { %77 = vrot.lane.b32.xlu0 %v1107_v1, %s1044_s16  ;;  %193 = vmatpush.msra.mxu1 %v159_v21  ;;  %v119_v33 = vld [vmem:[#allocation2 + $0x80] sm:$0xff]  ;;  %v114_v37 = vld [vmem:[#allocation2 + $0x58] sm:$0xff]  ;;  %v117_v39 = vld [vmem:[#allocation2 + $0x70] sm:$0xff] }
  0x18   :  { %217 = vmatpush.msra.mxu2 %v126_v14  ;;  %171 = vmatpush.msra.mxu0 %v125_v23  ;;  %v151_v34 = vld [vmem:[#allocation2 + $0x180] sm:$0xff]  ;;  %v149_v40 = vld [vmem:[#allocation2 + $0x170] sm:$0xff]  ;;  %v112_v41 = vld [vmem:[#allocation2 + $0x48] sm:$0xff] }
  0x19   :  { %194 = vmatpush.msra.mxu1 %v157_v24  ;;  %v115_v43 = vld [vmem:[#allocation2 + $0x60] sm:$0xff]  ;;  %v110_v44 = vld [vmem:[#allocation2 + $0x38] sm:$0xff]  ;;  %v113_v47 = vld [vmem:[#allocation2 + $0x50] sm:$0xff] }
  0x1a   :  { %218 = vmatpush.msra.mxu2 %v124_v19  ;;  %172 = vmatpush.msra.mxu0 %v123_v26  ;;  %v147_v45 = vld [vmem:[#allocation2 + $0x160] sm:$0xff]  ;;  %v108_v48 = vld [vmem:[#allocation2 + $0x28] sm:$0xff]  ;;  %v145_v49 = vld [vmem:[#allocation2 + $0x150] sm:$0xff] }
  0x1b   :  { %195 = vmatpush.msra.mxu1 %v155_v27  ;;  %v111_v50 = vld [vmem:[#allocation2 + $0x40] sm:$0xff]  ;;  %v106_v52 = vld [vmem:[#allocation2 + $0x18] sm:$0xff]  ;;  %v109_v55 = vld [vmem:[#allocation2 + $0x30] sm:$0xff] }
  0x1c   :  { %219 = vmatpush.msra.mxu2 %v122_v22  ;;  %173 = vmatpush.msra.mxu0 %v121_v30  ;;  %v143_v53 = vld [vmem:[#allocation2 + $0x140] sm:$0xff]  ;;  %v104_v56 = vld [vmem:[#allocation2 + $0x8] sm:$0xff]  ;;  %v141_v57 = vld [vmem:[#allocation2 + $0x130] sm:$0xff] }
  0x1d   :  { %196 = vmatpush.msra.mxu1 %v153_v31  ;;  %v166_v59 = vld [vmem:[#allocation2 + $0x1f8] sm:$0xff]  ;;  %v107_v60 = vld [vmem:[#allocation2 + $0x20] sm:$0xff]  ;;  %v164_v62 = vld [vmem:[#allocation2 + $0x1e8] sm:$0xff] }
  0x1e   :  { %220 = vmatpush.msra.mxu2 %v120_v25  ;;  %174 = vmatpush.msra.mxu0 %v119_v33  ;;  %v139_v63 = vld [vmem:[#allocation2 + $0x120] sm:$0xff]  ;;  %v158_v8 = vld [vmem:[#allocation2 + $0x1b8] sm:$0xff]  ;;  %v156_v9 = vld [vmem:[#allocation2 + $0x1a8] sm:$0xff]  ;;  %v1047_v33 = vmov 65  }
  0x1f   :  { %197 = vmatpush.msra.mxu1 %v151_v34  ;;  %v154_v10 = vld [vmem:[#allocation2 + $0x198] sm:$0xff]  ;;  %v152_v11 = vld [vmem:[#allocation2 + $0x188] sm:$0xff]  ;;  %v103_v19 = vld [vmem:[#allocation2] sm:$0xff]  ;;  %916 = vset.pattern.permute.xlu1 %v1047_v33 }
  0x20   :  { %221 = vmatpush.msra.mxu2 %v118_v29  ;;  %175 = vmatpush.msra.mxu0 %v117_v39  ;;  %v150_v12 = vld [vmem:[#allocation2 + $0x178] sm:$0xff]  ;;  %v148_v13 = vld [vmem:[#allocation2 + $0x168] sm:$0xff]  ;;  %v135_v20 = vld [vmem:[#allocation2 + $0x100] sm:$0xff] }
  0x21   :  { %198 = vmatpush.msra.mxu1 %v149_v40  ;;  %v146_v14 = vld [vmem:[#allocation2 + $0x158] sm:$0xff]  ;;  %v144_v15 = vld [vmem:[#allocation2 + $0x148] sm:$0xff]  ;;  %v1143_v22 = vld [vmem:[%s1363_s5] sm:$0xff]  ;;  %s1049_s5 = smov 96  }
  0x22   :  { %222 = vmatpush.msra.mxu2 %v116_v32  ;;  %176 = vmatpush.msra.mxu0 %v115_v43  ;;  %v142_v16 = vld [vmem:[#allocation2 + $0x138] sm:$0xff]  ;;  %v140_v17 = vld [vmem:[#allocation2 + $0x128] sm:$0xff]  ;;  %v259_v23 = vperm.slane %v1143_v22, 4  ;;  %v304_v24 = vperm.slane %v1143_v22, 5 }
  0x23   :  { %199 = vmatpush.msra.mxu1 %v147_v45  ;;  %v138_v18 = vld [vmem:[#allocation2 + $0x118] sm:$0xff]  ;;  %v136_v21 = vld [vmem:[#allocation2 + $0x108] sm:$0xff] }
  0x24   :  { %223 = vmatpush.msra.mxu2 %v114_v37  ;;  %177 = vmatpush.msra.mxu0 %v113_v47 }
  0x25   :  { %200 = vmatpush.msra.mxu1 %v145_v49  ;;  %261 = vrot.lane.b32.xlu0 %v259_v23, %s1044_s16 }
  0x26   :  { %224 = vmatpush.msra.mxu2 %v112_v41  ;;  %178 = vmatpush.msra.mxu0 %v111_v50 }
  0x27   :  { %201 = vmatpush.msra.mxu1 %v143_v53 }
  0x28   :  { %225 = vmatpush.msra.mxu2 %v110_v44  ;;  %179 = vmatpush.msra.mxu0 %v109_v55 }
  0x29   :  { %202 = vmatpush.msra.mxu1 %v141_v57  ;;  %v489_v57 = vld [vmem:[#allocation4 + $0xf8] sm:$0xff] }
  0x2a   :  { %226 = vmatpush.msra.mxu2 %v108_v48  ;;  %180 = vmatpush.msra.mxu0 %v107_v60 }
  0x2b   :  { %203 = vmatpush.msra.mxu1 %v139_v63 }
  0x2c   :  { %227 = vmatpush.msra.mxu2 %v106_v52 }
  0x2e   :  { %228 = vmatpush.msra.mxu2 %v104_v56 }
  0x2f   :  { %229 = vmatmul.f32.vlgmr.msra.gmra.mxu2 %v1100_v0 }
  0x30   :  { %236 = vmatpush.msrb.mxu2 %v166_v59  ;;  %v488_v59 = vld [vmem:[#allocation4 + $0xf0] sm:$0xff] }
  0x32   :  { %237 = vmatpush.msrb.mxu2 %v164_v62 }
  0x37   :  { %232 = vmatmul.f32.gmra.mxu2 %v1107_v1 }
  0x81   :  { %v76_v2 = vpop.permute.xlu0 %75 }
  0x82   :  { %v79_v3 = vadd.f32 %v76_v2, %v1100_v0  ;;  %v105_v2 = vld [vmem:[#allocation2 + $0x10] sm:$0xff] }
  0x83   :  { %181 = vmatpush.msra.mxu0 %v105_v2 }
  0x84   :  { %v1112_v4 = vmul.f32 0.5, %v79_v3  ;;  %v162_v3 = vld [vmem:[#allocation2 + $0x1d8] sm:$0xff] }
  0x85   :  { %238 = vmatpush.msrb.mxu2 %v162_v3  ;;  %182 = vmatpush.msra.mxu0 %v103_v19 }
  0x86   :  { %86 = vrot.lane.b32.xlu1 %v1112_v4, %s1045_s18  ;;  %183 = vmatmul.f32.vlgmr.msra.gmra.mxu0 %v1100_v0  ;;  %v1154_v26 = vsel %vm83_vm1, %v1112_v4, 0.0 }
  0x89   :  { %v78_v5 = vpop.permute.xlu0 %77 }
  0x8a   :  { %v80_v6 = vadd.f32 %v78_v5, %v1107_v1  ;;  %v137_v5 = vld [vmem:[#allocation2 + $0x110] sm:$0xff] }
  0x8b   :  { %204 = vmatpush.msra.mxu1 %v137_v5 }
  0x8c   :  { %v1116_v7 = vmul.f32 0.5, %v80_v6  ;;  %v160_v6 = vld [vmem:[#allocation2 + $0x1c8] sm:$0xff] }
  0x8d   :  { %239 = vmatpush.msrb.mxu2 %v160_v6  ;;  %205 = vmatpush.msra.mxu1 %v135_v20 }
  0x8e   :  { %88 = vrot.lane.b32.xlu1 %v1116_v7, %s1045_s18  ;;  %186 = vmatmul.f32.gmra.mxu0 %v1107_v1  ;;  %v1160_v29 = vsel %vm83_vm1, %v1116_v7, 0.0 }
  0x8f   :  { %240 = vmatpush.msrb.mxu2 %v158_v8  ;;  %513 = vmatpush.msrb.mxu1 %v489_v57  ;;  %v472_v57 = vld [vmem:[#allocation4 + $0x70] sm:$0xff] }
  0x91   :  { %241 = vmatpush.msrb.mxu2 %v156_v9  ;;  %514 = vmatpush.msrb.mxu1 %v488_v59  ;;  %v471_v59 = vld [vmem:[#allocation4 + $0x68] sm:$0xff] }
  0x93   :  { %242 = vmatpush.msrb.mxu2 %v154_v10 }
  0x95   :  { %243 = vmatpush.msrb.mxu2 %v152_v11 }
  0x96   :  { %306 = vrot.lane.b32.xlu1 %v304_v24, %s1046_s20 }
  0x97   :  { %244 = vmatpush.msrb.mxu2 %v150_v12  ;;  %v262_v37 = vpop.permute.xlu0 %261 }
  0x99   :  { %245 = vmatpush.msrb.mxu2 %v148_v13 }
  0x9b   :  { %246 = vmatpush.msrb.mxu2 %v146_v14 }
  0x9d   :  { %247 = vmatpush.msrb.mxu2 %v144_v15 }
  0x9f   :  { %248 = vmatpush.msrb.mxu2 %v142_v16 }
  0xa1   :  { %249 = vmatpush.msrb.mxu2 %v140_v17 }
  0xa3   :  { %250 = vmatpush.msrb.mxu2 %v138_v18 }
  0xa5   :  { %251 = vmatpush.msrb.mxu2 %v136_v21 }
  0xb2   :  { %v230_v31 = vpop.f32.mrf.mxu2 }
  0xba   :  { %v233_v32 = vpop.f32.mrf.mxu2 }
  0xf8   :  { %v87_v35 = vpop.permute.xlu1 %86 }
  0xf9   :  { %v90_v38 = vadd.f32 %v87_v35, %v1112_v4  ;;  %v1048_v4 = vmov 64  }
  0xfa   :  { %915 = vset.pattern.permute.xlu2 %v1048_v4  ;;  %917 = vset.pattern.permute.xlu0 %v1048_v4 }
  0xfb   :  { %v92_v42 = vmul.f32 0.5, %v90_v38 }
  0xfd   :  { %v1125_v46 = vsel %vm94_vm0, %v92_v42, 0.0 }
  0xfe   :  { %97 = vrot.lane.b32.xlu2 %v1125_v46, %s1044_s16 }
 0x100   :  { %v89_v51 = vpop.permute.xlu1 %88 }
 0x101   :  { %v91_v54 = vadd.f32 %v89_v51, %v1116_v7 }
 0x103   :  { %v93_v58 = vmul.f32 0.5, %v91_v54 }
 0x105   :  { %v1132_v61 = vsel %vm94_vm0, %v93_v58, 0.0  ;;  %v473_v58 = vld [vmem:[#allocation4 + $0x78] sm:$0xff] }
 0x106   :  { %99 = vrot.lane.b32.xlu2 %v1132_v61, %s1044_s16  ;;  %490 = vmatpush.msrb.mxu0 %v473_v58  ;;  %v487_v58 = vld [vmem:[#allocation4 + $0xe8] sm:$0xff] }
 0x107   :  { %515 = vmatpush.msrb.mxu1 %v487_v58 }
 0x108   :  { %v307_v34 = vpop.permute.xlu1 %306  ;;  %491 = vmatpush.msrb.mxu0 %v472_v57 }
 0x10a   :  { %492 = vmatpush.msrb.mxu0 %v471_v59 }
 0x158   :  { %v98_v25 = vpop.permute.xlu2 %97 }
 0x159   :  { %v101_v27 = vadd.f32 %v98_v25, %v1154_v26 }
 0x15b   :  { %206 = vmatmul.f32.vlgmr.msra.gmra.mxu1 %v101_v27  ;;  %252 = vmatmul.f32.vlgmr.msrb.gmra.mxu2 %v101_v27 }
 0x160   :  { %v100_v28 = vpop.permute.xlu2 %99 }
 0x161   :  { %v102_v30 = vadd.f32 %v100_v28, %v1160_v29 }
 0x163   :  { %209 = vmatmul.f32.gmra.mxu1 %v102_v30  ;;  %255 = vmatmul.f32.gmra.mxu2 %v102_v30 }
 0x1de   :  { %v253_v35 = vpop.f32.mrf.mxu2 }
 0x1df   :  { %v1166_v38 = vadd.f32 %v253_v35, %v230_v31 }
 0x1e1   :  { %v309_v7 = vadd.f32 %v307_v34, %v1166_v38  ;;  %v264_v39 = vadd.f32 %v262_v37, %v1166_v38 }
 0x1e3   :  { %v311_v40 = vsub.f32 0.0, %v309_v7  ;;  %v266_v41 = vsub.f32 0.0, %v264_v39 }
 0x1e5   :  { %v313_v42 = vmul.f32 1.442695, %v311_v40  ;;  %v268_v43 = vmul.f32 1.442695, %v266_v41 }
 0x1e6   :  { %v256_v44 = vpop.f32.mrf.mxu2 }
 0x1e7   :  { %929 = vpow2.f32 %v313_v42  ;;  %v1170_v45 = vadd.f32 %v256_v44, %v233_v32 }
 0x1e8   :  { %931 = vpow2.f32 %v268_v43 }
 0x1e9   :  { %v265_v47 = vadd.f32 %v262_v37, %v1170_v45  ;;  %v310_v48 = vadd.f32 %v307_v34, %v1170_v45 }
 0x1eb   :  { %v267_v49 = vsub.f32 0.0, %v265_v47  ;;  %v312_v50 = vsub.f32 0.0, %v310_v48 }
 0x1ed   :  { %v930_v51 = vpop.eup %929  ;;  %v270_v52 = vmul.f32 1.442695, %v267_v49  ;;  %v315_v55 = vmul.f32 1.442695, %v312_v50 }
 0x1ee   :  { %v932_v53 = vpop.eup %931  ;;  %v317_v54 = vadd.f32 1.0, %v930_v51 }
 0x1ef   :  { %v272_v56 = vadd.f32 1.0, %v932_v53  ;;  %933 = vpow2.f32 %v270_v52 }
 0x1f0   :  { %935 = vrcp.f32 %v317_v54  ;;  %v328_v10 = vand.u32 2147483647, %v317_v54  ;;  %v330_v11 = vand.u32 2147483648, %v317_v54  ;;  %vm324_vm4 = vweird.f32 %v317_v54 }
 0x1f1   :  { %937 = vrcp.f32 %v272_v56  ;;  %v285_v14 = vand.u32 2147483648, %v272_v56  ;;  %v283_v16 = vand.u32 2147483647, %v272_v56  ;;  %vm279_vm6 = vweird.f32 %v272_v56 }
 0x1f2   :  { %939 = vpow2.f32 %v315_v55  ;;  %v331_v19 = vor.u32 1.1754944e-38, %v330_v11  ;;  %vm329_vm7 = vcmp.eq.f32.partialorder %v328_v10, 8.507059e+37  ;;  %v480_v10 = vld [vmem:[#allocation4 + $0xb0] sm:$0xff] }
 0x1f3   :  { %v286_v23 = vor.u32 1.1754944e-38, %v285_v14  ;;  %vm284_vm9 = vcmp.eq.f32.partialorder %v283_v16, 8.507059e+37  ;;  %v464_v11 = vld [vmem:[#allocation4 + $0x30] sm:$0xff]  ;;  %v478_v14 = vld [vmem:[#allocation4 + $0xa0] sm:$0xff]  ;;  %v477_v16 = vld [vmem:[#allocation4 + $0x98] sm:$0xff] }
 0x1f5   :  { %v934_v60 = vpop.eup %933 }
 0x1f6   :  { %v936_v62 = vpop.eup %935  ;;  %v273_v63 = vadd.f32 1.0, %v934_v60  ;;  %v486_v60 = vld [vmem:[#allocation4 + $0xe0] sm:$0xff] }
 0x1f7   :  { %v938_v2 = vpop.eup %937  ;;  %v320_v3 = vmul.f32 %v936_v62, %v317_v54  ;;  %vm325_vm2 = vweird.f32 %v936_v62  ;;  %516 = vmatpush.msrb.mxu1 %v486_v60 }
 0x1f8   :  { %v940_v5 = vpop.eup %939  ;;  %941 = vrcp.f32 %v273_v63  ;;  %v275_v6 = vmul.f32 %v938_v2, %v272_v56  ;;  %vm280_vm3 = vweird.f32 %v938_v2  ;;  %vm326_vm5 = vmor %vm324_vm4, %vm325_vm2  ;;  %v300_v35 = vand.u32 2147483648, %v273_v63 }
 0x1f9   :  { %v318_v8 = vadd.f32 1.0, %v940_v5  ;;  %v321_v9 = vsub.f32 1.0, %v320_v3  ;;  %vm281_vm8 = vmor %vm279_vm6, %vm280_vm3  ;;  %v298_v39 = vand.u32 2147483647, %v273_v63  ;;  %vm294_vm11 = vweird.f32 %v273_v63  ;;  %v483_v3 = vld [vmem:[#allocation4 + $0xc8] sm:$0xff] }
 0x1fa   :  { %v276_v12 = vsub.f32 1.0, %v275_v6  ;;  %v301_v42 = vor.u32 1.1754944e-38, %v300_v35  ;;  %v467_v5 = vld [vmem:[#allocation4 + $0x48] sm:$0xff]  ;;  %v466_v6 = vld [vmem:[#allocation4 + $0x40] sm:$0xff] }
 0x1fb   :  { %943 = vrcp.f32 %v318_v8  ;;  %v322_v13 = vmul.f32 %v936_v62, %v321_v9  ;;  %v345_v44 = vand.u32 2147483648, %v318_v8  ;;  %vm299_vm14 = vcmp.eq.f32.partialorder %v298_v39, 8.507059e+37  ;;  %v465_v9 = vld [vmem:[#allocation4 + $0x38] sm:$0xff] }
 0x1fc   :  { %v277_v15 = vmul.f32 %v938_v2, %v276_v12  ;;  %v343_v48 = vand.u32 2147483647, %v318_v8  ;;  %vm339_vm15 = vweird.f32 %v318_v8  ;;  %v479_v12 = vld [vmem:[#allocation4 + $0xa8] sm:$0xff] }
 0x1fd   :  { %v323_v17 = vadd.f32 %v936_v62, %v322_v13  ;;  %v346_v53 = vor.u32 1.1754944e-38, %v345_v44  ;;  %v463_v13 = vld [vmem:[#allocation4 + $0x28] sm:$0xff] }
 0x1fe   :  { %v942_v18 = vpop.eup %941  ;;  %v278_v20 = vadd.f32 %v938_v2, %v277_v15  ;;  %vm344_vm2 = vcmp.eq.f32.partialorder %v343_v48, 8.507059e+37  ;;  %v462_v15 = vld [vmem:[#allocation4 + $0x20] sm:$0xff] }
 0x1ff   :  { %v327_v21 = vsel %vm326_vm5, %v936_v62, %v323_v17  ;;  %v290_v25 = vmul.f32 %v942_v18, %v273_v63  ;;  %vm295_vm10 = vweird.f32 %v942_v18  ;;  %v470_v62 = vld [vmem:[#allocation4 + $0x60] sm:$0xff]  ;;  %v485_v63 = vld [vmem:[#allocation4 + $0xd8] sm:$0xff] }
 0x200   :  { %v332_v27 = vsel %vm329_vm7, %v331_v19, %v327_v21  ;;  %v282_v28 = vsel %vm281_vm8, %v938_v2, %v278_v20  ;;  %vm296_vm12 = vmor %vm294_vm11, %vm295_vm10  ;;  %v469_v2 = vld [vmem:[#allocation4 + $0x58] sm:$0xff]  ;;  %493 = vmatpush.msrb.mxu0 %v470_v62  ;;  %517 = vmatpush.msrb.mxu1 %v485_v63  ;;  %v460_v19 = vld [vmem:[#allocation4 + $0x10] sm:$0xff] }
 0x201   :  { %v944_v30 = vpop.eup %943  ;;  %432 = vperm.xlu1 %916, %v332_v27   ;;  %v287_v31 = vsel %vm284_vm9, %v286_v23, %v282_v28  ;;  %v291_v32 = vsub.f32 1.0, %v290_v25  ;;  %v442_v51 = vsub.f32 1.0, %v332_v27  ;;  %v461_v17 = vld [vmem:[#allocation4 + $0x18] sm:$0xff]  ;;  %v475_v20 = vld [vmem:[#allocation4 + $0x88] sm:$0xff]  ;;  %v474_v23 = vld [vmem:[#allocation4 + $0x80] sm:$0xff]  ;;  %v184_v28 = vpop.f32.mrf.mxu0 }
 0x202   :  { %404 = vperm.xlu2 %915, %v287_v31   ;;  %v414_v34 = vsub.f32 1.0, %v287_v31  ;;  %v335_v37 = vmul.f32 %v944_v30, %v318_v8  ;;  %vm340_vm13 = vweird.f32 %v944_v30  ;;  %494 = vmatpush.msrb.mxu0 %v469_v2  ;;  %v481_v8 = vld [vmem:[#allocation4 + $0xb8] sm:$0xff]  ;;  %v459_v21 = vld [vmem:[#allocation4 + $0x8] sm:$0xff]  ;;  %v458_v25 = vld [vmem:[#allocation4] sm:$0xff]  ;;  %v397_v31 = vperm.slane %v1143_v22, 1 }
 0x203   :  { %v292_v7 = vmul.f32 %v942_v18, %v291_v32  ;;  %vm341_vm0 = vmor %vm339_vm15, %vm340_vm13 }
 0x204   :  { %418 = vperm.xlu0 %917, %v414_v34   ;;  %v336_v40 = vsub.f32 1.0, %v335_v37  ;;  %v398_v32 = vadd.f32 %v397_v31, %v1166_v38  ;;  %v394_v37 = vperm.slane %v1143_v22, 0 }
 0x205   :  { %v293_v41 = vadd.f32 %v942_v18, %v292_v7 }
 0x206   :  { %v337_v43 = vmul.f32 %v944_v30, %v336_v40  ;;  %v400_v7 = vsel %vm83_vm1, %v398_v32, 0.0 }
 0x207   :  { %v297_v47 = vsel %vm296_vm12, %v942_v18, %v293_v41  ;;  %v476_v18 = vld [vmem:[#allocation4 + $0x90] sm:$0xff] }
 0x208   :  { %v302_v49 = vsel %vm299_vm14, %v301_v42, %v297_v47  ;;  %v338_v50 = vadd.f32 %v944_v30, %v337_v43 }
 0x209   :  { %919 = vset.pattern.permute.xlu1 %v1048_v4  ;;  %v415_v56 = vsub.f32 1.0, %v302_v49  ;;  %v187_v41 = vpop.f32.mrf.mxu0 }
 0x20a   :  { %918 = vset.pattern.permute.xlu2 %v1047_v33  ;;  %409 = vperm.xlu1 %919, %v302_v49   ;;  %v342_v52 = vsel %vm341_vm0, %v944_v30, %v338_v50  ;;  %v207_v30 = vpop.f32.mrf.mxu1 }
 0x20b   :  { %446 = vperm.xlu2 %918, %v442_v51   ;;  %v347_v54 = vsel %vm344_vm2, %v346_v53, %v342_v52  ;;  %v208_v35 = vadd.f32 %v207_v30, %v184_v28 }
 0x20c   :  { %921 = vset.pattern.permute.xlu0 %v1047_v33  ;;  %v443_v55 = vsub.f32 1.0, %v347_v54 }
 0x20d   :  { %437 = vperm.xlu0 %921, %v347_v54   ;;  %v395_v44 = vadd.f32 %v394_v37, %v208_v35 }
 0x212   :  { %922 = vset.pattern.permute.xlu1 %v1047_v33  ;;  %v484_v33 = vld [vmem:[#allocation4 + $0xd0] sm:$0xff]  ;;  %v210_v40 = vpop.f32.mrf.mxu1 }
 0x213   :  { %920 = vset.pattern.permute.xlu2 %v1048_v4  ;;  %451 = vperm.xlu1 %922, %v443_v55   ;;  %v468_v4 = vld [vmem:[#allocation4 + $0x50] sm:$0xff]  ;;  %v211_v49 = vadd.f32 %v210_v40, %v187_v41  ;;  %v349_v40 = vperm.slane %v1143_v22, 6 }
 0x214   :  { %423 = vperm.xlu2 %920, %v415_v56   ;;  %518 = vmatpush.msrb.mxu1 %v484_v33 }
 0x215   :  { %495 = vmatpush.msrb.mxu0 %v468_v4  ;;  %v396_v54 = vadd.f32 %v394_v37, %v211_v49 }
 0x216   :  { %519 = vmatpush.msrb.mxu1 %v483_v3 }
 0x217   :  { %496 = vmatpush.msrb.mxu0 %v467_v5  ;;  %v1050_v5 = vmov 96  }
 0x218   :  { %925 = vset.pattern.permute.xlu0 %v1050_v5 }
 0x219   :  { %497 = vmatpush.msrb.mxu0 %v466_v6 }
 0x21b   :  { %498 = vmatpush.msrb.mxu0 %v465_v9  ;;  %923 = vset.pattern.permute.xlu1 %v1050_v5 }
 0x21c   :  { %536 = vrot.lane.b32.xlu2 %v304_v24, %s1049_s5  ;;  %v482_v24 = vld [vmem:[#allocation4 + $0xc0] sm:$0xff] }
 0x21d   :  { %520 = vmatpush.msrb.mxu1 %v482_v24  ;;  %499 = vmatpush.msrb.mxu0 %v464_v11 }
 0x21e   :  { %924 = vset.pattern.permute.xlu2 %v1050_v5 }
 0x21f   :  { %521 = vmatpush.msrb.mxu1 %v481_v8  ;;  %500 = vmatpush.msrb.mxu0 %v463_v13 }
 0x221   :  { %522 = vmatpush.msrb.mxu1 %v480_v10  ;;  %501 = vmatpush.msrb.mxu0 %v462_v15  ;;  %v627_v15 = vld [vmem:[#allocation6 + $0x78] sm:$0xff] }
 0x222   :  { %629 = vmatpush.msra.mxu2 %v627_v15 }
 0x223   :  { %523 = vmatpush.msrb.mxu1 %v479_v12  ;;  %502 = vmatpush.msrb.mxu0 %v461_v17 }
 0x225   :  { %524 = vmatpush.msrb.mxu1 %v478_v14  ;;  %503 = vmatpush.msrb.mxu0 %v460_v19 }
 0x227   :  { %525 = vmatpush.msrb.mxu1 %v477_v16  ;;  %504 = vmatpush.msrb.mxu0 %v459_v21  ;;  %v626_v16 = vld [vmem:[#allocation6 + $0x70] sm:$0xff] }
 0x228   :  { %630 = vmatpush.msra.mxu2 %v626_v16 }
 0x229   :  { %526 = vmatpush.msrb.mxu1 %v476_v18  ;;  %505 = vmatpush.msrb.mxu0 %v458_v25  ;;  %v625_v18 = vld [vmem:[#allocation6 + $0x68] sm:$0xff] }
 0x22a   :  { %631 = vmatpush.msra.mxu2 %v625_v18 }
 0x22b   :  { %527 = vmatpush.msrb.mxu1 %v475_v20 }
 0x22d   :  { %528 = vmatpush.msrb.mxu1 %v474_v23 }
 0x25c   :  { %v405_v27 = vpop.permute.xlu2 %404 }
 0x25d   :  { %v412_v50 = vmul.f32 %v405_v27, %v1100_v0 }
 0x265   :  { %v447_v34 = vpop.permute.xlu2 %446 }
 0x266   :  { %v454_v42 = vmul.f32 %v447_v34, %v400_v7 }
 0x26e   :  { %v424_v53 = vpop.permute.xlu2 %423 }
 0x26f   :  { %v427_v56 = vmul.f32 %v424_v53, %v396_v54  ;;  %v624_v53 = vld [vmem:[#allocation6 + $0x60] sm:$0xff]  ;;  %v623_v54 = vld [vmem:[#allocation6 + $0x58] sm:$0xff] }
 0x270   :  { %632 = vmatpush.msra.mxu2 %v624_v53 }
 0x272   :  { %633 = vmatpush.msra.mxu2 %v623_v54 }
 0x273   :  { %v433_v39 = vpop.permute.xlu1 %432 }
 0x274   :  { %v440_v43 = vmul.f32 %v433_v39, %v1154_v26  ;;  %v399_v26 = vadd.f32 %v397_v31, %v1170_v45 }
 0x276   :  { %v1187_v47 = vadd.f32 %v454_v42, %v440_v43  ;;  %v419_v48 = vpop.permute.xlu0 %418  ;;  %v401_v0 = vsel %vm83_vm1, %v399_v26, 0.0  ;;  %v537_v33 = vpop.permute.xlu2 %536  ;;  %v618_v26 = vld [vmem:[#allocation6 + $0x30] sm:$0xff] }
 0x277   :  { %v426_v51 = vmul.f32 %v419_v48, %v395_v44 }
 0x278   :  { %529 = vmatmul.f32.vlgmr.msrb.gmra.mxu1 %v1187_v47 }
 0x279   :  { %v428_v52 = vadd.f32 %v426_v51, %v412_v50 }
 0x27b   :  { %506 = vmatmul.f32.vlgmr.msrb.gmra.mxu0 %v428_v52 }
 0x27c   :  { %v410_v55 = vpop.permute.xlu1 %409 }
 0x27d   :  { %v413_v57 = vmul.f32 %v410_v55, %v1107_v1  ;;  %v622_v55 = vld [vmem:[#allocation6 + $0x50] sm:$0xff] }
 0x27e   :  { %634 = vmatpush.msra.mxu2 %v622_v55 }
 0x27f   :  { %v429_v58 = vadd.f32 %v427_v56, %v413_v57  ;;  %v438_v59 = vpop.permute.xlu0 %437  ;;  %v621_v56 = vld [vmem:[#allocation6 + $0x48] sm:$0xff]  ;;  %v620_v57 = vld [vmem:[#allocation6 + $0x40] sm:$0xff] }
 0x280   :  { %v441_v62 = vmul.f32 %v438_v59, %v1160_v29  ;;  %635 = vmatpush.msra.mxu2 %v621_v56  ;;  %v617_v59 = vld [vmem:[#allocation6 + $0x28] sm:$0xff]  ;;  %v628_v56 = vperm.slane %v1143_v22, 3 }
 0x281   :  { %749 = vmatpush.msra.mxu3 %v429_v58 }
 0x282   :  { %636 = vmatpush.msra.mxu2 %v620_v57 }
 0x283   :  { %509 = vmatmul.f32.gmra.mxu0 %v429_v58  ;;  %750 = vmatpush.msra.mxu3 %v428_v52  ;;  %v619_v58 = vld [vmem:[#allocation6 + $0x38] sm:$0xff] }
 0x284   :  { %637 = vmatpush.msra.mxu2 %v619_v58 }
 0x285   :  { %v452_v60 = vpop.permute.xlu1 %451 }
 0x286   :  { %v455_v63 = vmul.f32 %v452_v60, %v401_v0  ;;  %638 = vmatpush.msra.mxu2 %v618_v26  ;;  %v616_v0 = vld [vmem:[#allocation6 + $0x20] sm:$0xff]  ;;  %v615_v60 = vld [vmem:[#allocation6 + $0x18] sm:$0xff] }
 0x288   :  { %v1196_v2 = vadd.f32 %v455_v63, %v441_v62  ;;  %639 = vmatpush.msra.mxu2 %v617_v59  ;;  %v614_v62 = vld [vmem:[#allocation6 + $0x10] sm:$0xff]  ;;  %v613_v63 = vld [vmem:[#allocation6 + $0x8] sm:$0xff] }
 0x28a   :  { %532 = vmatmul.f32.gmra.mxu1 %v1196_v2  ;;  %640 = vmatpush.msra.mxu2 %v616_v0 }
 0x28c   :  { %641 = vmatpush.msra.mxu2 %v615_v60 }
 0x28e   :  { %642 = vmatpush.msra.mxu2 %v614_v62 }
 0x290   :  { %643 = vmatpush.msra.mxu2 %v613_v63 }
 0x2f5   :  { %v530_v1 = vpop.f32.mrf.mxu1 }
 0x2f8   :  { %v507_v4 = vpop.f32.mrf.mxu0 }
 0x2f9   :  { %v1199_v3 = vadd.f32 %v530_v1, %v507_v4  ;;  %v1052_v4 = vmov 66  }
 0x2fb   :  { %v539_v24 = vadd.f32 %v537_v33, %v1199_v3 }
 0x2fd   :  { %v541_v6 = vsub.f32 0.0, %v539_v24 }
 0x2ff   :  { %v543_v8 = vmul.f32 1.442695, %v541_v6 }
 0x300   :  { %v510_v9 = vpop.f32.mrf.mxu0 }
 0x301   :  { %945 = vpow2.f32 %v543_v8 }
 0x307   :  { %v946_v29 = vpop.eup %945  ;;  %v533_v10 = vpop.f32.mrf.mxu1 }
 0x308   :  { %v547_v11 = vadd.f32 1.0, %v946_v29  ;;  %v1202_v12 = vadd.f32 %v533_v10, %v510_v9 }
 0x30a   :  { %947 = vrcp.f32 %v547_v11  ;;  %v540_v13 = vadd.f32 %v537_v33, %v1202_v12  ;;  %v560_v23 = vand.u32 2147483648, %v547_v11  ;;  %v558_v27 = vand.u32 2147483647, %v547_v11  ;;  %v612_v33 = vld [vmem:[#allocation6] sm:$0xff] }
 0x30b   :  { %vm554_vm4 = vweird.f32 %v547_v11  ;;  %644 = vmatpush.msra.mxu2 %v612_v33 }
 0x30c   :  { %v542_v14 = vsub.f32 0.0, %v540_v13  ;;  %v561_v32 = vor.u32 1.1754944e-38, %v560_v23  ;;  %vm559_vm6 = vcmp.eq.f32.partialorder %v558_v27, 8.507059e+37 }
 0x30e   :  { %v545_v17 = vmul.f32 1.442695, %v542_v14 }
 0x310   :  { %v948_v19 = vpop.eup %947  ;;  %949 = vpow2.f32 %v545_v17 }
 0x311   :  { %v550_v20 = vmul.f32 %v948_v19, %v547_v11  ;;  %vm555_vm3 = vweird.f32 %v948_v19  ;;  %v579_v11 = vperm.slane %v1143_v22, 2  ;;  %v686_v22 = vld [vmem:[%s1359_s1] sm:$0xff] }
 0x312   :  { %vm556_vm5 = vmor %vm554_vm4, %vm555_vm3 }
 0x313   :  { %v551_v21 = vsub.f32 1.0, %v550_v20  ;;  %v580_v13 = vadd.f32 %v579_v11, %v1199_v3 }
 0x315   :  { %v552_v25 = vmul.f32 %v948_v19, %v551_v21  ;;  %v582_v16 = vsel %vm83_vm1, %v580_v13, 0.0  ;;  %v696_v13 = vld [vmem:[%s1359_s1 + $0x50] sm:$0xff] }
 0x316   :  { %v950_v28 = vpop.eup %949 }
 0x317   :  { %v548_v30 = vadd.f32 1.0, %v950_v28  ;;  %v553_v31 = vadd.f32 %v948_v19, %v552_v25  ;;  %v581_v28 = vadd.f32 %v579_v11, %v1202_v12  ;;  %v695_v11 = vld [vmem:[%s1359_s1 + $0x48] sm:$0xff] }
 0x319   :  { %951 = vrcp.f32 %v548_v30  ;;  %v557_v34 = vsel %vm556_vm5, %v948_v19, %v553_v31  ;;  %v575_v42 = vand.u32 2147483648, %v548_v30  ;;  %v573_v44 = vand.u32 2147483647, %v548_v30 }
 0x31a   :  { %v562_v35 = vsel %vm559_vm6, %v561_v32, %v557_v34  ;;  %vm569_vm8 = vweird.f32 %v548_v30 }
 0x31b   :  { %586 = vperm.xlu1 %923, %v562_v35   ;;  %v596_v37 = vsub.f32 1.0, %v562_v35  ;;  %v576_v49 = vor.u32 1.1754944e-38, %v575_v42  ;;  %vm574_vm10 = vcmp.eq.f32.partialorder %v573_v44, 8.507059e+37 }
 0x31d   :  { %600 = vperm.xlu2 %924, %v596_v37  }
 0x31f   :  { %v952_v7 = vpop.eup %951 }
 0x320   :  { %v565_v39 = vmul.f32 %v952_v7, %v548_v30  ;;  %vm570_vm7 = vweird.f32 %v952_v7 }
 0x321   :  { %vm571_vm9 = vmor %vm569_vm8, %vm570_vm7 }
 0x322   :  { %v566_v41 = vsub.f32 1.0, %v565_v39 }
 0x324   :  { %v567_v43 = vmul.f32 %v952_v7, %v566_v41 }
 0x325   :  { %351 = vrot.lane.b32.xlu2 %v349_v40, %s1051_s21  ;;  %v583_v40 = vsel %vm83_vm1, %v581_v28, 0.0  ;;  %vm698_vm1 = vcmask 130048  }
 0x326   :  { %v568_v48 = vadd.f32 %v952_v7, %v567_v43  ;;  %927 = vset.pattern.permute.xlu2 %v1052_v4  ;;  %871 = vmatmul.msk.f32.vlgmr.msra.gmra.mxu3 %vm698_vm1, %v686_v22 }
 0x328   :  { %v572_v50 = vsel %vm571_vm9, %v952_v7, %v568_v48 }
 0x329   :  { %v577_v51 = vsel %vm574_vm10, %v576_v49, %v572_v50 }
 0x32a   :  { %591 = vperm.xlu0 %925, %v577_v51   ;;  %v597_v52 = vsub.f32 1.0, %v577_v51 }
 0x32c   :  { %605 = vperm.xlu1 %923, %v597_v52  }
 0x332   :  { %928 = vset.pattern.permute.xlu0 %v1052_v4 }
 0x334   :  { %926 = vset.pattern.permute.xlu1 %v1052_v4 }
 0x377   :  { %v601_v1 = vpop.permute.xlu2 %600 }
 0x37f   :  { %v352_v5 = vpop.permute.xlu2 %351 }
 0x380   :  { %v354_v24 = vadd.f32 %v352_v5, %v1166_v38  ;;  %v355_v6 = vadd.f32 %v352_v5, %v1170_v45  ;;  %v608_v38 = vmul.f32 %v601_v1, %v582_v16 }
 0x382   :  { %v356_v8 = vsub.f32 0.0, %v354_v24  ;;  %v357_v29 = vsub.f32 0.0, %v355_v6  ;;  %v689_v24 = vld [vmem:[%s1359_s1 + $0x18] sm:$0xff]  ;;  %v690_v6 = vld [vmem:[%s1359_s1 + $0x20] sm:$0xff] }
 0x384   :  { %v358_v9 = vmul.f32 1.442695, %v356_v8  ;;  %v360_v10 = vmul.f32 1.442695, %v357_v29  ;;  %v691_v8 = vld [vmem:[%s1359_s1 + $0x28] sm:$0xff]  ;;  %v692_v29 = vld [vmem:[%s1359_s1 + $0x30] sm:$0xff] }
 0x386   :  { %953 = vpow2.f32 %v358_v9  ;;  %v693_v9 = vld [vmem:[%s1359_s1 + $0x38] sm:$0xff] }
 0x387   :  { %955 = vpow2.f32 %v360_v10  ;;  %v694_v10 = vld [vmem:[%s1359_s1 + $0x40] sm:$0xff] }
 0x38c   :  { %v954_v14 = vpop.eup %953 }
 0x38d   :  { %v956_v15 = vpop.eup %955  ;;  %v362_v17 = vadd.f32 1.0, %v954_v14  ;;  %v587_v18 = vpop.permute.xlu1 %586  ;;  %v697_v14 = vld [vmem:[%s1359_s1 + $0x58] sm:$0xff] }
 0x38e   :  { %v363_v19 = vadd.f32 1.0, %v956_v15  ;;  %v594_v45 = vmul.f32 %v587_v18, %v1187_v47 }
 0x38f   :  { %957 = vrcp.f32 %v362_v17  ;;  %v373_v30 = vand.u32 2147483647, %v362_v17  ;;  %v375_v31 = vand.u32 2147483648, %v362_v17  ;;  %vm369_vm13 = vweird.f32 %v362_v17 }
 0x390   :  { %959 = vrcp.f32 %v363_v19  ;;  %v1213_v20 = vadd.f32 %v608_v38, %v594_v45  ;;  %v388_v35 = vand.u32 2147483647, %v363_v19  ;;  %v390_v47 = vand.u32 2147483648, %v363_v19 }
 0x391   :  { %v376_v41 = vor.u32 1.1754944e-38, %v375_v31  ;;  %vm384_vm15 = vweird.f32 %v363_v19  ;;  %vm374_vm0 = vcmp.eq.f32.partialorder %v373_v30, 8.507059e+37 }
 0x392   :  { %645 = vmatmul.f32.vlgmr.msra.gmra.mxu2 %v1213_v20  ;;  %vm389_vm3 = vcmp.eq.f32.partialorder %v388_v35, 8.507059e+37  ;;  %v391_v44 = vor.u32 1.1754944e-38, %v390_v47 }
 0x395   :  { %v958_v21 = vpop.eup %957 }
 0x396   :  { %v960_v23 = vpop.eup %959  ;;  %v365_v3 = vmul.f32 %v958_v21, %v362_v17  ;;  %vm370_vm11 = vweird.f32 %v958_v21 }
 0x397   :  { %v380_v25 = vmul.f32 %v960_v23, %v363_v19  ;;  %vm385_vm12 = vweird.f32 %v960_v23  ;;  %vm371_vm14 = vmor %vm369_vm13, %vm370_vm11 }
 0x398   :  { %v366_v27 = vsub.f32 1.0, %v365_v3  ;;  %vm386_vm2 = vmor %vm384_vm15, %vm385_vm12 }
 0x399   :  { %v381_v32 = vsub.f32 1.0, %v380_v25 }
 0x39a   :  { %v367_v34 = vmul.f32 %v958_v21, %v366_v27 }
 0x39b   :  { %v382_v37 = vmul.f32 %v960_v23, %v381_v32 }
 0x39c   :  { %v592_v7 = vpop.permute.xlu0 %591  ;;  %v368_v39 = vadd.f32 %v958_v21, %v367_v34 }
 0x39d   :  { %v383_v42 = vadd.f32 %v960_v23, %v382_v37  ;;  %v595_v48 = vmul.f32 %v592_v7, %v1196_v2 }
 0x39e   :  { %v606_v12 = vpop.permute.xlu1 %605  ;;  %v372_v43 = vsel %vm371_vm14, %v958_v21, %v368_v39 }
 0x39f   :  { %v609_v49 = vmul.f32 %v606_v12, %v583_v40  ;;  %v377_v50 = vsel %vm374_vm0, %v376_v41, %v372_v43  ;;  %v387_v51 = vsel %vm386_vm2, %v960_v23, %v383_v42 }
 0x3a0   :  { %654 = vperm.xlu0 %928, %v377_v50   ;;  %v392_v52 = vsel %vm389_vm3, %v391_v44, %v387_v51  ;;  %v664_v54 = vsub.f32 1.0, %v377_v50 }
 0x3a1   :  { %v665_v53 = vsub.f32 1.0, %v392_v52  ;;  %659 = vperm.xlu1 %926, %v392_v52   ;;  %v611_v36 = vadd.f32 %v609_v49, %v595_v48 }
 0x3a3   :  { %673 = vperm.xlu2 %927, %v665_v53   ;;  %648 = vmatmul.f32.gmra.mxu2 %v611_v36 }
 0x3a9   :  { %668 = vperm.xlu1 %926, %v664_v54   ;;  %v752_v38 = vpop.f32.mrf.mxu3 }
 0x3aa   :  { %841 = vst [vmem:[%s1364_s6] sm:$0xff] %v752_v38 }
 0x3fd   :  { %v674_v33 = vpop.permute.xlu2 %673 }
 0x412   :  { %v655_v58 = vpop.permute.xlu0 %654 }
 0x413   :  { %v660_v55 = vpop.permute.xlu1 %659  ;;  %v662_v2 = vmul.f32 %v655_v58, %v1125_v46  ;;  %v687_v46 = vld [vmem:[%s1359_s1 + $0x8] sm:$0xff] }
 0x414   :  { %v663_v1 = vmul.f32 %v660_v55, %v1132_v61  ;;  %872 = vmatmul.msk.f32.gmra.mxu3 %vm698_vm1, %v687_v46  ;;  %v688_v61 = vld [vmem:[%s1359_s1 + $0x10] sm:$0xff] }
 0x415   :  { %v646_v57 = vpop.f32.mrf.mxu2 }
 0x416   :  { %v647_v26 = vadd.f32 %v646_v57, %v628_v56 }
 0x41b   :  { %v669_v59 = vpop.permute.xlu1 %668 }
 0x41c   :  { %v676_v0 = vmul.f32 %v669_v59, %v647_v26  ;;  %873 = vmatmul.msk.f32.gmra.mxu3 %vm698_vm1, %v688_v61 }
 0x41e   :  { %v678_v60 = vadd.f32 %v676_v0, %v662_v2 }
 0x420   :  { %680 = vrot.lane.b32.xlu1 %v678_v60, %s1044_s16 }
 0x424   :  { %874 = vmatmul.msk.f32.gmra.mxu3 %vm698_vm1, %v689_v24 }
 0x426   :  { %v649_v62 = vpop.f32.mrf.mxu2 }
 0x427   :  { %v650_v63 = vadd.f32 %v649_v62, %v628_v56 }
 0x429   :  { %v677_v4 = vmul.f32 %v674_v33, %v650_v63 }
 0x42b   :  { %v679_v5 = vadd.f32 %v677_v4, %v663_v1 }
 0x42c   :  { %875 = vmatmul.msk.f32.gmra.mxu3 %vm698_vm1, %v690_v6 }
 0x42d   :  { %682 = vrot.lane.b32.xlu2 %v679_v5, %s1044_s16 }
 0x434   :  { %876 = vmatmul.msk.f32.gmra.mxu3 %vm698_vm1, %v691_v8 }
 0x43c   :  { %877 = vmatmul.msk.f32.gmra.mxu3 %vm698_vm1, %v692_v29 }
 0x444   :  { %878 = vmatmul.msk.f32.gmra.mxu3 %vm698_vm1, %v693_v9 }
 0x44c   :  { %879 = vmatmul.msk.f32.gmra.mxu3 %vm698_vm1, %v694_v10 }
 0x454   :  { %880 = vmatmul.msk.f32.gmra.mxu3 %vm698_vm1, %v695_v11 }
 0x45c   :  { %881 = vmatmul.msk.f32.gmra.mxu3 %vm698_vm1, %v696_v13 }
 0x464   :  { %882 = vmatmul.msk.f32.gmra.mxu3 %vm698_vm1, %v697_v14 }
 0x487   :  { %v683_v15 = vpop.permute.xlu2 %682 }
 0x488   :  { %v685_v16 = vadd.f32 %v683_v15, %v611_v36 }
 0x48a   :  { %802 = vmatpush.msra.mxu0 %v685_v16  ;;  %895 = vmatpush.msra.mxu1 %v685_v16 }
 0x48b   :  { %896 = vmatpush.msrb.mxu3 %v685_v16 }
 0x492   :  { %v681_v17 = vpop.permute.xlu1 %680 }
 0x493   :  { %v684_v18 = vadd.f32 %v681_v17, %v1213_v20 }
 0x495   :  { %803 = vmatpush.msra.mxu0 %v684_v18  ;;  %897 = vmatpush.msra.mxu1 %v684_v18 }
 0x496   :  { %898 = vmatpush.msrb.mxu3 %v684_v18  ;;  %883 = vmatmul.msk.f32.vlgmr.msra.gmra.mxu0 %vm698_vm1, %v686_v22 }
 0x497   :  { %888 = vmatmul.msk.f32.vlgmr.msra.gmra.mxu1 %vm698_vm1, %v691_v8  ;;  %893 = vmatmul.msk.f32.vlgmr.msrb.gmra.mxu3 %vm698_vm1, %v696_v13  ;;  %v755_v19 = vpop.f32.mrf.mxu3 }
 0x498   :  { %843 = vst [vmem:[%s1364_s6 + $0x10] sm:$0xff] %v755_v19 }
 0x49e   :  { %884 = vmatmul.msk.f32.gmra.mxu0 %vm698_vm1, %v687_v46 }
 0x49f   :  { %889 = vmatmul.msk.f32.gmra.mxu1 %vm698_vm1, %v692_v29  ;;  %894 = vmatmul.msk.f32.gmra.mxu3 %vm698_vm1, %v697_v14  ;;  %v758_v45 = vpop.f32.mrf.mxu3 }
 0x4a0   :  { %845 = vst [vmem:[%s1364_s6 + $0x20] sm:$0xff] %v758_v45 }
 0x4a6   :  { %885 = vmatmul.msk.f32.gmra.mxu0 %vm698_vm1, %v688_v61 }
 0x4a7   :  { %890 = vmatmul.msk.f32.gmra.mxu1 %vm698_vm1, %v693_v9  ;;  %v761_v20 = vpop.f32.mrf.mxu3 }
 0x4a8   :  { %847 = vst [vmem:[%s1364_s6 + $0x30] sm:$0xff] %v761_v20 }
 0x4ae   :  { %886 = vmatmul.msk.f32.gmra.mxu0 %vm698_vm1, %v689_v24 }
 0x4af   :  { %891 = vmatmul.msk.f32.gmra.mxu1 %vm698_vm1, %v694_v10  ;;  %v764_v21 = vpop.f32.mrf.mxu3 }
 0x4b0   :  { %849 = vst [vmem:[%s1364_s6 + $0x40] sm:$0xff] %v764_v21 }
 0x4b6   :  { %887 = vmatmul.msk.f32.gmra.mxu0 %vm698_vm1, %v690_v6 }
 0x4b7   :  { %892 = vmatmul.msk.f32.gmra.mxu1 %vm698_vm1, %v695_v11  ;;  %v767_v23 = vpop.f32.mrf.mxu3 }
 0x4b8   :  { %851 = vst [vmem:[%s1364_s6 + $0x50] sm:$0xff] %v767_v23 }
 0x4bf   :  { %v770_v3 = vpop.f32.mrf.mxu3 }
 0x4c0   :  { %853 = vst [vmem:[%s1364_s6 + $0x60] sm:$0xff] %v770_v3 }
 0x4c7   :  { %v773_v25 = vpop.f32.mrf.mxu3 }
 0x4c8   :  { %855 = vst [vmem:[%s1364_s6 + $0x70] sm:$0xff] %v773_v25 }
 0x4cf   :  { %v776_v27 = vpop.f32.mrf.mxu3 }
 0x4d0   :  { %857 = vst [vmem:[%s1364_s6 + $0x80] sm:$0xff] %v776_v27 }
 0x4d7   :  { %v779_v28 = vpop.f32.mrf.mxu3 }
 0x4d8   :  { %859 = vst [vmem:[%s1364_s6 + $0x90] sm:$0xff] %v779_v28 }
 0x4df   :  { %v782_v30 = vpop.f32.mrf.mxu3 }
 0x4e0   :  { %861 = vst [vmem:[%s1364_s6 + $0xa0] sm:$0xff] %v782_v30 }
 0x4e7   :  { %v785_v31 = vpop.f32.mrf.mxu3 }
 0x4e8   :  { %863 = vst [vmem:[%s1364_s6 + $0xb0] sm:$0xff] %v785_v31 }
 0x513   :  { %v805_v32 = vpop.f32.mrf.mxu0 }
 0x514   :  { %842 = vst [vmem:[%s1364_s6 + $0x8] sm:$0xff] %v805_v32  ;;  %v820_v34 = vpop.f32.mrf.mxu1 }
 0x515   :  { %852 = vst [vmem:[%s1364_s6 + $0x58] sm:$0xff] %v820_v34 }
 0x51a   :  { %v835_v35 = vpop.f32.mrf.mxu3 }
 0x51b   :  { %v808_v47 = vpop.f32.mrf.mxu0  ;;  %862 = vst [vmem:[%s1364_s6 + $0xa8] sm:$0xff] %v835_v35 }
 0x51c   :  { %844 = vst [vmem:[%s1364_s6 + $0x18] sm:$0xff] %v808_v47  ;;  %v823_v37 = vpop.f32.mrf.mxu1 }
 0x51d   :  { %854 = vst [vmem:[%s1364_s6 + $0x68] sm:$0xff] %v823_v37 }
 0x522   :  { %v838_v7 = vpop.f32.mrf.mxu3 }
 0x523   :  { %v811_v39 = vpop.f32.mrf.mxu0  ;;  %864 = vst [vmem:[%s1364_s6 + $0xb8] sm:$0xff] %v838_v7 }
 0x524   :  { %846 = vst [vmem:[%s1364_s6 + $0x28] sm:$0xff] %v811_v39  ;;  %v826_v40 = vpop.f32.mrf.mxu1 }
 0x525   :  { %856 = vst [vmem:[%s1364_s6 + $0x78] sm:$0xff] %v826_v40 }
 0x52b   :  { %v814_v41 = vpop.f32.mrf.mxu0 }
 0x52c   :  { %848 = vst [vmem:[%s1364_s6 + $0x38] sm:$0xff] %v814_v41  ;;  %v829_v42 = vpop.f32.mrf.mxu1 }
 0x52d   :  { %858 = vst [vmem:[%s1364_s6 + $0x88] sm:$0xff] %v829_v42 }
 0x533   :  { %v817_v12 = vpop.f32.mrf.mxu0 }
 0x534   :  { %850 = vst [vmem:[%s1364_s6 + $0x48] sm:$0xff] %v817_v12  ;;  %v832_v43 = vpop.f32.mrf.mxu1 }
 0x535   :  { %860 = vst [vmem:[%s1364_s6 + $0x98] sm:$0xff] %v832_v43 }
 0x536   :  { %869 = vsyncpa [#allocation3], 1 }
 0x537   :  { %870 = vsyncpa [#allocation5], 1 }

</bundles_post_ra>
